<compile_context>
chip_gen: v7x
topology: tpu7x:2x2x1
jax: 0.10.0
libtpu: 0.0.40
codegen_flags: <defaults>
</compile_context>

<pallas_src>
import jax
import jax.numpy as jnp
from jax import lax
from jax.experimental import pallas as pl
from jax.experimental.pallas import tpu as pltpu


def _round_up(x, m):
    return ((x + m - 1) // m) * m


def _classifier_kernel(ids_ref, emb_ref, w_ref, b_ref, out_ref):
    """One grid step computes logits for one TILE_B-row batch tile.

    ids_ref : VMEM (TILE_B, S)     int32  token ids for this batch tile
    emb_ref : VMEM (V_pad, D_pad)  f32    embedding table (constant block index)
    w_ref   : VMEM (D_pad, C_pad)  f32    fc weight, transposed + zero padded
    b_ref   : VMEM (1, C_pad)      f32    fc bias, zero padded
    out_ref : VMEM (TILE_B, C_pad) f32    logits tile (lane-dense store)
    """
    tile_b, seq_len = ids_ref.shape
    v_pad = emb_ref.shape[0]

    ids = ids_ref[...]                                          # (TILE_B, S)
    vocab = lax.broadcasted_iota(jnp.int32, (tile_b, v_pad), 1)

    # counts[b, v] = #{s : ids[b, s] == v}.  S is a small compile-time constant
    # (demo: 8), so a static loop of VPU compare+adds is cheap and fully visible
    # to the scheduler.
    # TODO(synk): for very long sequences chunk this with lax.fori_loop.
    counts = jnp.zeros((tile_b, v_pad), jnp.float32)
    for s in range(seq_len):
        hit = jnp.where(vocab == ids[:, s:s + 1],
                        jnp.float32(1.0), jnp.float32(0.0))
        counts = counts + hit

    # Mean-pool as a single MXU matmul: (TILE_B, V_pad) @ (V_pad, D_pad).
    pooled = jnp.dot(counts * jnp.float32(1.0 / seq_len), emb_ref[...],
                     preferred_element_type=jnp.float32)

    # FC layer: (TILE_B, D_pad) @ (D_pad, C_pad) + bias.
    logits = jnp.dot(pooled, w_ref[...],
                     preferred_element_type=jnp.float32) + b_ref[...]
    out_ref[...] = logits.astype(out_ref.dtype)


def _vmem_limit_bytes(resident_bytes):
    """Clamp the scoped-VMEM request to the chip's real capacity (v7x: 64 MiB)."""
    try:
        cap = int(pltpu.get_tpu_info().vmem_capacity_bytes)
    except Exception:
        cap = 64 * 2**20                    # conservative fallback = v7x
    headroom = 8 * 2**20                    # pipeline buffers / compiler scratch
    want = 2 * resident_bytes + headroom    # constant blocks are double-buffered
    return int(max(16 * 2**20, min(cap - headroom, max(32 * 2**20, want))))


def simple_embedding_classifier(ids, emb_table, fc_weight, fc_bias, *,
                                max_tile_b=128):
    """ids: (B, S) int; emb_table: (V, D); fc_weight: (C, D); fc_bias: (C,)."""
    B, S = ids.shape
    V, D = emb_table.shape
    C = fc_bias.shape[0]

    LANES = 128
    # Up-to-128-row batch tiles fill the MXU M dimension and amortize the
    # ~0.35us per-grid-step overhead; small batches shrink the tile instead of
    # padding to 128.  (On v6e/v7x max_tile_b=256 is also reasonable.)
    TILE_B = min(max_tile_b, _round_up(B, 8))
    B_pad = _round_up(B, TILE_B)
    n_tiles = B_pad // TILE_B
    V_pad = _round_up(V, LANES)     # lane-dense K dim for the one-hot matmul
    D_pad = _round_up(D, LANES)
    C_pad = _round_up(C, LANES)

    # Zero-pad operands once in the wrapper to lane/sublane-friendly shapes.
    emb_pad = jnp.zeros((V_pad, D_pad), jnp.float32).at[:V, :D].set(
        emb_table.astype(jnp.float32))
    w_pad = jnp.zeros((D_pad, C_pad), jnp.float32).at[:D, :C].set(
        fc_weight.T.astype(jnp.float32))
    b_pad = jnp.zeros((1, C_pad), jnp.float32).at[0, :C].set(
        fc_bias.astype(jnp.float32))
    # Clamp ids so malformed inputs can never index outside the table (the
    # one-hot gather would only drop them, but clamping matches Embedding's
    # valid-id contract).  Padded batch rows use token 0 and are sliced off.
    ids_pad = jnp.zeros((B_pad, S), jnp.int32).at[:B, :].set(
        jnp.clip(ids.astype(jnp.int32), 0, V - 1))

    resident_bytes = 4 * (emb_pad.size + w_pad.size + b_pad.size)
    # TODO(synk): when 2*resident_bytes approaches the chip's VMEM capacity
    # (earliest on v7x's 64 MiB), switch to a bf16 table + streaming manual-DMA
    # row gather and single-buffer the constant blocks (pipeline_mode=pl.Buffered(1)).
    vmem_limit = _vmem_limit_bytes(resident_bytes)

    out_pad = pl.pallas_call(
        _classifier_kernel,
        out_shape=jax.ShapeDtypeStruct((B_pad, C_pad), jnp.float32),
        grid=(n_tiles,),
        in_specs=[
            # Per-tile token ids (tiny VMEM DMA per step).
            pl.BlockSpec((TILE_B, S), lambda i: (i, 0)),
            # Embedding table / FC params: constant block index -> fetched once,
            # VMEM-resident across the whole grid.
            pl.BlockSpec((V_pad, D_pad), lambda i: (0, 0)),
            pl.BlockSpec((D_pad, C_pad), lambda i: (0, 0)),
            pl.BlockSpec((1, C_pad), lambda i: (0, 0)),
        ],
        out_specs=pl.BlockSpec((TILE_B, C_pad), lambda i: (i, 0)),
        compiler_params=pltpu.CompilerParams(
            # Batch-tile axis is embarrassingly parallel (megacore on v7x when
            # n_tiles >= 2).
            dimension_semantics=("parallel",),
            vmem_limit_bytes=vmem_limit,
        ),
    )(ids_pad, emb_pad, w_pad, b_pad)

    return out_pad[:B, :C]


if __name__ == "__main__":
    # Small deterministic shapes consistent with the module.
    V, D, C = 50, 64, 8      # vocab size, embedding dim, num classes
    B, S = 2, 8              # batch, sequence length

    key = jax.random.PRNGKey(0)
    k_emb, k_w, k_b, k_ids = jax.random.split(key, 4)

    # Demo parameters are rounded to bf16-representable values so the check is
    # insensitive to the MXU's f32 pass precision across TPU generations.
    embedding_matrix = jax.random.normal(k_emb, (V, D), dtype=jnp.float32)
    embedding_matrix = embedding_matrix.astype(jnp.bfloat16).astype(jnp.float32)
    fc_weight = jax.random.normal(k_w, (C, D), dtype=jnp.float32) * 0.1
    fc_weight = fc_weight.astype(jnp.bfloat16).astype(jnp.float32)
    fc_bias = jax.random.normal(k_b, (C,), dtype=jnp.float32) * 0.1
    ids = jax.random.randint(k_ids, (B, S), 0, V, dtype=jnp.int32)

    logits = simple_embedding_classifier(ids, embedding_matrix, fc_weight, fc_bias)
    logits = jax.block_until_ready(logits)

    # Pure-JAX reference (matches PyTorch forward semantics).
    ref = jnp.take(embedding_matrix, ids, axis=0).mean(axis=1) @ fc_weight.T + fc_bias
    assert logits.shape == (B, C)
    assert jnp.allclose(logits, ref, atol=1e-4, rtol=1e-4), (
        float(jnp.max(jnp.abs(logits - ref))))

    print("KERNEL_OK")
</pallas_src>

<mosaic_0001>
module attributes {stable_mosaic.version = 11 : i64} {
  func.func @_classifier_kernel(%arg0: i32, %arg1: memref<8x8xi32, #tpu.memory_space<vmem>>, %arg2: memref<128x128xf32, #tpu.memory_space<vmem>>, %arg3: memref<128x128xf32, #tpu.memory_space<vmem>>, %arg4: memref<1x128xf32, #tpu.memory_space<vmem>>, %arg5: memref<8x128xf32, #tpu.memory_space<vmem>>) attributes {dimension_semantics = [#tpu.dimension_semantics<parallel>], iteration_bounds = array<i64: 1>, scalar_prefetch = 0 : i64, scratch_operands = 0 : i64, tpu.core_type = #tpu.core_type<tc>, window_params = [{transform_indices = @transform_0, window_bounds = array<i64: 8, 8>}, {pipeline_mode = #tpu.pipeline_mode<synchronous>, transform_indices = @transform_1, window_bounds = array<i64: 128, 128>}, {pipeline_mode = #tpu.pipeline_mode<synchronous>, transform_indices = @transform_2, window_bounds = array<i64: 128, 128>}, {pipeline_mode = #tpu.pipeline_mode<synchronous>, transform_indices = @transform_3, window_bounds = array<i64: 1, 128>}, {transform_indices = @transform_4, window_bounds = array<i64: 8, 128>}]} {
    %c0 = arith.constant 0 : index
    %c0_0 = arith.constant 0 : index
    %0 = vector.load %arg1[%c0, %c0_0] : memref<8x8xi32, #tpu.memory_space<vmem>>, vector<8x8xi32>
    %1 = tpu.iota {dimensions = array<i32: 1>} : vector<8x128xi32>
    %cst = arith.constant 0.000000e+00 : f32
    %2 = vector.broadcast %cst : f32 to vector<8x128xf32>
    %3 = vector.extract_strided_slice %0 {offsets = [0, 0], sizes = [8, 1], strides = [1, 1]} : vector<8x8xi32> to vector<8x1xi32>
    %4 = vector.broadcast %3 : vector<8x1xi32> to vector<8x128xi32>
    %5 = arith.cmpi eq, %1, %4 : vector<8x128xi32>
    %cst_1 = arith.constant 1.000000e+00 : f32
    %cst_2 = arith.constant 0.000000e+00 : f32
    %6 = vector.broadcast %cst_1 : f32 to vector<8x128xf32>
    %7 = vector.broadcast %cst_2 : f32 to vector<8x128xf32>
    %8 = arith.select %5, %6, %7 : vector<8x128xi1>, vector<8x128xf32>
    %9 = arith.addf %2, %8 : vector<8x128xf32>
    %10 = vector.extract_strided_slice %0 {offsets = [0, 1], sizes = [8, 1], strides = [1, 1]} : vector<8x8xi32> to vector<8x1xi32>
    %11 = vector.broadcast %10 : vector<8x1xi32> to vector<8x128xi32>
    %12 = arith.cmpi eq, %1, %11 : vector<8x128xi32>
    %cst_3 = arith.constant 1.000000e+00 : f32
    %cst_4 = arith.constant 0.000000e+00 : f32
    %13 = vector.broadcast %cst_3 : f32 to vector<8x128xf32>
    %14 = vector.broadcast %cst_4 : f32 to vector<8x128xf32>
    %15 = arith.select %12, %13, %14 : vector<8x128xi1>, vector<8x128xf32>
    %16 = arith.addf %9, %15 : vector<8x128xf32>
    %17 = vector.extract_strided_slice %0 {offsets = [0, 2], sizes = [8, 1], strides = [1, 1]} : vector<8x8xi32> to vector<8x1xi32>
    %18 = vector.broadcast %17 : vector<8x1xi32> to vector<8x128xi32>
    %19 = arith.cmpi eq, %1, %18 : vector<8x128xi32>
    %cst_5 = arith.constant 1.000000e+00 : f32
    %cst_6 = arith.constant 0.000000e+00 : f32
    %20 = vector.broadcast %cst_5 : f32 to vector<8x128xf32>
    %21 = vector.broadcast %cst_6 : f32 to vector<8x128xf32>
    %22 = arith.select %19, %20, %21 : vector<8x128xi1>, vector<8x128xf32>
    %23 = arith.addf %16, %22 : vector<8x128xf32>
    %24 = vector.extract_strided_slice %0 {offsets = [0, 3], sizes = [8, 1], strides = [1, 1]} : vector<8x8xi32> to vector<8x1xi32>
    %25 = vector.broadcast %24 : vector<8x1xi32> to vector<8x128xi32>
    %26 = arith.cmpi eq, %1, %25 : vector<8x128xi32>
    %cst_7 = arith.constant 1.000000e+00 : f32
    %cst_8 = arith.constant 0.000000e+00 : f32
    %27 = vector.broadcast %cst_7 : f32 to vector<8x128xf32>
    %28 = vector.broadcast %cst_8 : f32 to vector<8x128xf32>
    %29 = arith.select %26, %27, %28 : vector<8x128xi1>, vector<8x128xf32>
    %30 = arith.addf %23, %29 : vector<8x128xf32>
    %31 = vector.extract_strided_slice %0 {offsets = [0, 4], sizes = [8, 1], strides = [1, 1]} : vector<8x8xi32> to vector<8x1xi32>
    %32 = vector.broadcast %31 : vector<8x1xi32> to vector<8x128xi32>
    %33 = arith.cmpi eq, %1, %32 : vector<8x128xi32>
    %cst_9 = arith.constant 1.000000e+00 : f32
    %cst_10 = arith.constant 0.000000e+00 : f32
    %34 = vector.broadcast %cst_9 : f32 to vector<8x128xf32>
    %35 = vector.broadcast %cst_10 : f32 to vector<8x128xf32>
    %36 = arith.select %33, %34, %35 : vector<8x128xi1>, vector<8x128xf32>
    %37 = arith.addf %30, %36 : vector<8x128xf32>
    %38 = vector.extract_strided_slice %0 {offsets = [0, 5], sizes = [8, 1], strides = [1, 1]} : vector<8x8xi32> to vector<8x1xi32>
    %39 = vector.broadcast %38 : vector<8x1xi32> to vector<8x128xi32>
    %40 = arith.cmpi eq, %1, %39 : vector<8x128xi32>
    %cst_11 = arith.constant 1.000000e+00 : f32
    %cst_12 = arith.constant 0.000000e+00 : f32
    %41 = vector.broadcast %cst_11 : f32 to vector<8x128xf32>
    %42 = vector.broadcast %cst_12 : f32 to vector<8x128xf32>
    %43 = arith.select %40, %41, %42 : vector<8x128xi1>, vector<8x128xf32>
    %44 = arith.addf %37, %43 : vector<8x128xf32>
    %45 = vector.extract_strided_slice %0 {offsets = [0, 6], sizes = [8, 1], strides = [1, 1]} : vector<8x8xi32> to vector<8x1xi32>
    %46 = vector.broadcast %45 : vector<8x1xi32> to vector<8x128xi32>
    %47 = arith.cmpi eq, %1, %46 : vector<8x128xi32>
    %cst_13 = arith.constant 1.000000e+00 : f32
    %cst_14 = arith.constant 0.000000e+00 : f32
    %48 = vector.broadcast %cst_13 : f32 to vector<8x128xf32>
    %49 = vector.broadcast %cst_14 : f32 to vector<8x128xf32>
    %50 = arith.select %47, %48, %49 : vector<8x128xi1>, vector<8x128xf32>
    %51 = arith.addf %44, %50 : vector<8x128xf32>
    %52 = vector.extract_strided_slice %0 {offsets = [0, 7], sizes = [8, 1], strides = [1, 1]} : vector<8x8xi32> to vector<8x1xi32>
    %53 = vector.broadcast %52 : vector<8x1xi32> to vector<8x128xi32>
    %54 = arith.cmpi eq, %1, %53 : vector<8x128xi32>
    %cst_15 = arith.constant 1.000000e+00 : f32
    %cst_16 = arith.constant 0.000000e+00 : f32
    %55 = vector.broadcast %cst_15 : f32 to vector<8x128xf32>
    %56 = vector.broadcast %cst_16 : f32 to vector<8x128xf32>
    %57 = arith.select %54, %55, %56 : vector<8x128xi1>, vector<8x128xf32>
    %58 = arith.addf %51, %57 : vector<8x128xf32>
    %cst_17 = arith.constant 1.250000e-01 : f32
    %59 = vector.broadcast %cst_17 : f32 to vector<8x128xf32>
    %60 = arith.mulf %58, %59 : vector<8x128xf32>
    %c0_18 = arith.constant 0 : index
    %c0_19 = arith.constant 0 : index
    %61 = vector.load %arg2[%c0_18, %c0_19] : memref<128x128xf32, #tpu.memory_space<vmem>>, vector<128x128xf32>
    %cst_20 = arith.constant dense<0.000000e+00> : vector<8x128xf32>
    %62 = tpu.matmul %60, %61, %cst_20 {dimension_numbers = #tpu.dot_dimension_numbers<[1], [0], [0], [1], [0, 0, 1, 1], [], []>} : vector<8x128xf32>, vector<128x128xf32>, vector<8x128xf32> -> vector<8x128xf32>
    %c0_21 = arith.constant 0 : index
    %c0_22 = arith.constant 0 : index
    %63 = vector.load %arg3[%c0_21, %c0_22] : memref<128x128xf32, #tpu.memory_space<vmem>>, vector<128x128xf32>
    %cst_23 = arith.constant dense<0.000000e+00> : vector<8x128xf32>
    %64 = tpu.matmul %62, %63, %cst_23 {dimension_numbers = #tpu.dot_dimension_numbers<[1], [0], [0], [1], [0, 0, 1, 1], [], []>} : vector<8x128xf32>, vector<128x128xf32>, vector<8x128xf32> -> vector<8x128xf32>
    %c0_24 = arith.constant 0 : index
    %c0_25 = arith.constant 0 : index
    %65 = vector.load %arg4[%c0_24, %c0_25] : memref<1x128xf32, #tpu.memory_space<vmem>>, vector<1x128xf32>
    %66 = vector.broadcast %65 : vector<1x128xf32> to vector<8x128xf32>
    %67 = arith.addf %64, %66 : vector<8x128xf32>
    %c0_26 = arith.constant 0 : index
    %c0_27 = arith.constant 0 : index
    %68 = vector.load %arg5[%c0_26, %c0_27] : memref<8x128xf32, #tpu.memory_space<vmem>>, vector<8x128xf32>
    tpu.vector_store %arg5[%c0_26, %c0_27], %67 {strides = array<i32>} : memref<8x128xf32, #tpu.memory_space<vmem>>, vector<8x128xf32>,
    return
  }
  func.func @transform_0(%arg0: i32) -> (i32, i32) {
    %c0_i32 = arith.constant 0 : i32
    %c0_i32_0 = arith.constant 0 : i32
    return %arg0, %c0_i32 : i32, i32
  }
  func.func @transform_1(%arg0: i32) -> (i32, i32) {
    %c0_i32 = arith.constant 0 : i32
    %c0_i32_0 = arith.constant 0 : i32
    %c0_i32_1 = arith.constant 0 : i32
    return %c0_i32, %c0_i32_0 : i32, i32
  }
  func.func @transform_2(%arg0: i32) -> (i32, i32) {
    %c0_i32 = arith.constant 0 : i32
    %c0_i32_0 = arith.constant 0 : i32
    %c0_i32_1 = arith.constant 0 : i32
    return %c0_i32, %c0_i32_0 : i32, i32
  }
  func.func @transform_3(%arg0: i32) -> (i32, i32) {
    %c0_i32 = arith.constant 0 : i32
    %c0_i32_0 = arith.constant 0 : i32
    %c0_i32_1 = arith.constant 0 : i32
    return %c0_i32, %c0_i32_0 : i32, i32
  }
  func.func @transform_4(%arg0: i32) -> (i32, i32) {
    %c0_i32 = arith.constant 0 : i32
    %c0_i32_0 = arith.constant 0 : i32
    return %arg0, %c0_i32 : i32, i32
  }
}

</mosaic_0001>

<bundles_post_ra>
// kernel: tpu_custom_call.1
= control target key start
LH: loop header
LB: loop body
LE: loop exit
PB: predicated region body
PF: predicated region fallthrough
CT: control target
= control target key end

     0   :  { %9 = vsyncpa [#allocation3], 0  ;;  %s703_s0 = inlined_call_operand.hbm [shape: s32[8,8], index: 0, kind: input, shape index: {}]   ;;  %s704_s1 = inlined_call_operand.hbm [shape: f32[128,128], index: 1, kind: input, shape index: {}]   ;;  %s705_s2 = inlined_call_operand.hbm [shape: f32[128,128], index: 2, kind: input, shape index: {}]   ;;  %s706_s3 = inlined_call_operand.vmem [shape: f32[1,128], index: 3, kind: input, shape index: {}]   ;;  %s707_s4 = inlined_call_operand.hbm [shape: f32[8,128], index: 4, kind: output, shape index: {}]  }
   0x1   :  { %10 = vsyncpa [#allocation6], 0 }
   0x2   :  { %11 = vsyncpa [#allocation4], 0  ;;  %s578_s15 = smov [#allocation5]   ;;  %s484_s19 = scalar_lea.hbm %s704_s1, 2048 }
   0x3   :  { %s27_s16 = sshll.u32 %s578_s15, 4  ;;  %p485_p0 = scmp.ne.s32.totalorder %s704_s1, %s484_s19  ;;  %s28_s16 = int_to_ptr.vmem [resolvable:$true] %s27_s16 }
   0x4   :  { %p488_p1 = scmp.lt.u32.totalorder %s484_s19, %s704_s1 }
   0x6   :  { %p490_p2 = pnand %p488_p1, %p485_p0 }
   0x8   :  { %493 = shalt.err (!%p490_p2)
}
   0x9   :  { %s494_s24 = scalar_lea.vmem %s28_s16, 2048  ;;  %p499_p4 = scmp.lt.s32.totalorder %s28_s16, %s28_s16 }
   0xa   :  { %p495_p3 = scmp.ne.s32.totalorder %s28_s16, %s494_s24  ;;  %p500_p5 = scmp.lt.s32.totalorder %s494_s24, %s494_s24 }
   0xc   :  { %p501_p6 = por %p500_p5, %p499_p4 }
   0xe   :  { %p502_p7 = pnand %p501_p6, %p495_p3 }
  0x10   :  { %505 = shalt.err (!%p502_p7)
}
  0x11   :  { %s579_s25 = smov 128   ;;  %s580_s26 = smov 8  }
  0x12   :  { %33 = dma.hbm_to_vmem [thread:$0]  %s704_s1, 2048, %s28_s16, [#allocation6], %s579_s25, %s579_s25, %s580_s26  }
  0x13   :  { %s581_s29 = smov [#allocation2]   ;;  %s582_s5 = smov [#allocation7]  }
  0x14   :  { %s18_s30 = sshll.u32 %s581_s29, 4  ;;  %s39_s6 = sshll.u32 %s582_s5, 4  ;;  %s19_s30 = int_to_ptr.vmem [resolvable:$true] %s18_s30  ;;  %s40_s6 = int_to_ptr.vmem [resolvable:$true] %s39_s6 }
  0x15   :  { %s506_s9 = scalar_lea.hbm %s703_s0, 128 }
  0x16   :  { %p507_p8 = scmp.ne.s32.totalorder %s703_s0, %s506_s9  ;;  %p510_p9 = scmp.lt.u32.totalorder %s506_s9, %s703_s0 }
  0x18   :  { %p512_p10 = pnand %p510_p9, %p507_p8 }
  0x1a   :  { %515 = shalt.err (!%p512_p10)
}
  0x1b   :  { %s516_s1 = scalar_lea.vmem %s19_s30, 128  ;;  %p521_p12 = scmp.lt.s32.totalorder %s19_s30, %s19_s30 }
  0x1c   :  { %p517_p11 = scmp.ne.s32.totalorder %s19_s30, %s516_s1  ;;  %p522_p13 = scmp.lt.s32.totalorder %s516_s1, %s516_s1 }
  0x1e   :  { %p523_p0 = por %p522_p13, %p521_p12 }
  0x20   :  { %p524_p1 = pnand %p523_p0, %p517_p11 }
  0x22   :  { %527 = shalt.err (!%p524_p1)
}
  0x23   :  { %21 = dma.hbm_to_vmem [thread:$0]  %s703_s0, 128, %s19_s30, [#allocation3]  }
  0x24   :  { %s528_s18 = scalar_lea.hbm %s705_s2, 2048 }
  0x25   :  { %p529_p2 = scmp.ne.s32.totalorder %s705_s2, %s528_s18  ;;  %p532_p3 = scmp.lt.u32.totalorder %s528_s18, %s705_s2 }
  0x27   :  { %p534_p4 = pnand %p532_p3, %p529_p2 }
  0x29   :  { %537 = shalt.err (!%p534_p4)
}
  0x2a   :  { %s538_s23 = scalar_lea.vmem %s40_s6, 2048  ;;  %p543_p6 = scmp.lt.s32.totalorder %s40_s6, %s40_s6 }
  0x2b   :  { %p539_p5 = scmp.ne.s32.totalorder %s40_s6, %s538_s23  ;;  %p544_p7 = scmp.lt.s32.totalorder %s538_s23, %s538_s23 }
  0x2d   :  { %p545_p8 = por %p544_p7, %p543_p6 }
  0x2f   :  { %p546_p9 = pnand %p545_p8, %p539_p5 }
  0x31   :  { %549 = shalt.err (!%p546_p9)
}
  0x32   :  { %45 = dma.hbm_to_vmem [thread:$0]  %s705_s2, 2048, %s40_s6, [#allocation6], %s579_s25, %s579_s25, %s580_s26  }
  0x33   :  { %572 = dma.done.wait [#allocation3], 128  }
  0x34   :  { %573 = vsyncadd [#allocation3], 4294967168 }
  0x35   :  { %574 = dma.done.wait [#allocation6], 4096  }
  0x36   :  { %575 = vsyncadd [#allocation6], 4294963200  ;;  %v583_v0 = vmov 2   ;;  %v584_v1 = vmov 0   ;;  %v585_v2 = vmov 0.0|0.0   ;;  %v57_v3 = vld [vmem:[#allocation2] sm:$0xff]  ;;  %v58_v59 = vlaneseq }
  0x37   :  { %477 = vset.pattern.permute.xlu1 %v583_v0  ;;  %475 = vset.pattern.permute.xlu0 %v584_v1  ;;  %v109_v4 = vld [vmem:[#allocation5] sm:$0xff]  ;;  %v110_v5 = vld [vmem:[#allocation5 + $0x8] sm:$0xff]  ;;  %v111_v7 = vld [vmem:[#allocation5 + $0x10] sm:$0xff]  ;;  %v586_v10 = vmov 3   ;;  %v587_v11 = vmov 1   ;;  %v588_v17 = vmov 4  }
  0x38   :  { %410 = vmatprep.subr.bf16.mxu0 %v585_v2  ;;  %434 = vmatprep.subr.bf16.mxu1 %v585_v2  ;;  %v411_v6 = vpack.c.bf16 %v110_v5, %v109_v4  ;;  %v112_v8 = vld [vmem:[#allocation5 + $0x18] sm:$0xff]  ;;  %v113_v12 = vld [vmem:[#allocation5 + $0x20] sm:$0xff]  ;;  %v114_v13 = vld [vmem:[#allocation5 + $0x28] sm:$0xff]  ;;  %v589_v18 = vmov 5   ;;  %v590_v22 = vmov 6   ;;  %v591_v23 = vmov 7  }
  0x39   :  { %73 = vperm.xlu1 %477, %v57_v3   ;;  %61 = vperm.xlu0 %475, %v57_v3   ;;  %v414_v9 = vpack.c.bf16 %v112_v8, %v111_v7  ;;  %v417_v14 = vpack.c.bf16 %v114_v13, %v113_v12  ;;  %v115_v15 = vld [vmem:[#allocation5 + $0x30] sm:$0xff]  ;;  %v116_v16 = vld [vmem:[#allocation5 + $0x38] sm:$0xff]  ;;  %v117_v20 = vld [vmem:[#allocation5 + $0x40] sm:$0xff]  ;;  %vm592_vm0 = vmmov 0   ;;  %v593_v33 = vmov 0.0   ;;  %s594_s26 = smov [#allocation8]  }
  0x3a   :  { %412 = vmatpush3.bf16.msra.mxu0 %v411_v6  ;;  %v420_v19 = vpack.c.bf16 %v116_v16, %v115_v15  ;;  %v118_v21 = vld [vmem:[#allocation5 + $0x48] sm:$0xff]  ;;  %v119_v25 = vld [vmem:[#allocation5 + $0x50] sm:$0xff]  ;;  %v120_v26 = vld [vmem:[#allocation5 + $0x58] sm:$0xff]  ;;  %372 = vmatprep.mubr.msk.f32.mxu0 %vm592_vm0, %v593_v33  ;;  %v59_v62 = vand.u32 127, %v58_v59  ;;  %s295_s27 = sshll.u32 %s594_s26, 4  ;;  %s296_s27 = int_to_ptr.vmem [resolvable:$true] %s295_s27 }
  0x3b   :  { %413 = vmatprep.subr.bf16.mxu0 %v585_v2  ;;  %v423_v24 = vpack.c.bf16 %v118_v21, %v117_v20  ;;  %v426_v27 = vpack.c.bf16 %v120_v26, %v119_v25  ;;  %v121_v28 = vld [vmem:[#allocation5 + $0x60] sm:$0xff]  ;;  %v122_v29 = vld [vmem:[#allocation5 + $0x68] sm:$0xff]  ;;  %v123_v31 = vld [vmem:[#allocation5 + $0x70] sm:$0xff]  ;;  %407 = vmatprep.mubr.msk.f32.mxu1 %vm592_vm0, %v593_v33  ;;  %s550_s28 = scalar_lea.vmem %s296_s27, 128  ;;  %p555_p11 = scmp.lt.s32.totalorder %s296_s27, %s296_s27 }
  0x3c   :  { %v429_v30 = vpack.c.bf16 %v122_v29, %v121_v28  ;;  %v124_v32 = vld [vmem:[#allocation5 + $0x78] sm:$0xff]  ;;  %v195_v34 = vld [vmem:[#allocation7] sm:$0xff]  ;;  %v196_v35 = vld [vmem:[#allocation7 + $0x8] sm:$0xff]  ;;  %p551_p10 = scmp.ne.s32.totalorder %s296_s27, %s550_s28  ;;  %p556_p12 = scmp.lt.s32.totalorder %s550_s28, %s550_s28 }
  0x3d   :  { %478 = vset.pattern.permute.xlu1 %v586_v10  ;;  %476 = vset.pattern.permute.xlu0 %v587_v11  ;;  %v197_v36 = vld [vmem:[#allocation7 + $0x10] sm:$0xff]  ;;  %v432_v37 = vpack.c.bf16 %v124_v32, %v123_v31  ;;  %v435_v38 = vpack.c.bf16 %v196_v35, %v195_v34  ;;  %v198_v39 = vld [vmem:[#allocation7 + $0x18] sm:$0xff]  ;;  %v199_v41 = vld [vmem:[#allocation7 + $0x20] sm:$0xff] }
  0x3e   :  { %79 = vperm.xlu1 %478, %v57_v3   ;;  %67 = vperm.xlu0 %476, %v57_v3   ;;  %v438_v40 = vpack.c.bf16 %v198_v39, %v197_v36  ;;  %v200_v42 = vld [vmem:[#allocation7 + $0x28] sm:$0xff]  ;;  %v201_v44 = vld [vmem:[#allocation7 + $0x30] sm:$0xff]  ;;  %v202_v45 = vld [vmem:[#allocation7 + $0x38] sm:$0xff]  ;;  %p557_p13 = por %p556_p12, %p555_p11 }
  0x3f   :  { %415 = vmatpush3.bf16.msra.mxu0 %v414_v9  ;;  %436 = vmatpush3.bf16.msra.mxu1 %v435_v38  ;;  %v441_v43 = vpack.c.bf16 %v200_v42, %v199_v41  ;;  %v444_v46 = vpack.c.bf16 %v202_v45, %v201_v44  ;;  %v203_v47 = vld [vmem:[#allocation7 + $0x40] sm:$0xff]  ;;  %v204_v48 = vld [vmem:[#allocation7 + $0x48] sm:$0xff]  ;;  %v205_v50 = vld [vmem:[#allocation7 + $0x50] sm:$0xff] }
  0x40   :  { %416 = vmatprep.subr.bf16.mxu0 %v585_v2  ;;  %437 = vmatprep.subr.bf16.mxu1 %v585_v2  ;;  %v447_v49 = vpack.c.bf16 %v204_v48, %v203_v47  ;;  %v206_v51 = vld [vmem:[#allocation7 + $0x58] sm:$0xff]  ;;  %v207_v53 = vld [vmem:[#allocation7 + $0x60] sm:$0xff]  ;;  %v208_v54 = vld [vmem:[#allocation7 + $0x68] sm:$0xff]  ;;  %p558_p0 = pnand %p557_p13, %p551_p10 }
  0x41   :  { %v450_v52 = vpack.c.bf16 %v206_v51, %v205_v50  ;;  %v453_v55 = vpack.c.bf16 %v208_v54, %v207_v53  ;;  %v209_v56 = vld [vmem:[#allocation7 + $0x70] sm:$0xff]  ;;  %v210_v57 = vld [vmem:[#allocation7 + $0x78] sm:$0xff] }
  0x42   :  { %479 = vset.pattern.permute.xlu1 %v588_v17  ;;  %480 = vset.pattern.permute.xlu0 %v589_v18  ;;  %v456_v58 = vpack.c.bf16 %v210_v57, %v209_v56 }
  0x43   :  { %85 = vperm.xlu1 %479, %v57_v3   ;;  %91 = vperm.xlu0 %480, %v57_v3  }
  0x44   :  { %418 = vmatpush3.bf16.msra.mxu0 %v417_v14  ;;  %439 = vmatpush3.bf16.msra.mxu1 %v438_v40 }
  0x45   :  { %419 = vmatprep.subr.bf16.mxu0 %v585_v2  ;;  %440 = vmatprep.subr.bf16.mxu1 %v585_v2 }
  0x47   :  { %481 = vset.pattern.permute.xlu1 %v590_v22  ;;  %483 = vset.pattern.permute.xlu0 %v591_v23 }
  0x48   :  { %97 = vperm.xlu1 %481, %v57_v3   ;;  %421 = vmatpush3.bf16.msra.mxu0 %v420_v19 }
  0x49   :  { %422 = vmatprep.subr.bf16.mxu0 %v585_v2  ;;  %442 = vmatpush3.bf16.msra.mxu1 %v441_v43 }
  0x4a   :  { %443 = vmatprep.subr.bf16.mxu1 %v585_v2 }
  0x4c   :  { %482 = vset.pattern.permute.xlu1 %v591_v23  ;;  %424 = vmatpush3.bf16.msra.mxu0 %v423_v24  ;;  %v305_v23 = vld [vmem:[%s706_s3] ss:$0 sm:$0xff] }
  0x4d   :  { %103 = vperm.xlu1 %482, %v57_v3   ;;  %425 = vmatprep.subr.bf16.mxu0 %v585_v2 }
  0x4e   :  { %445 = vmatpush3.bf16.msra.mxu1 %v444_v46 }
  0x4f   :  { %446 = vmatprep.subr.bf16.mxu1 %v585_v2 }
  0x50   :  { %427 = vmatpush3.bf16.msra.mxu0 %v426_v27 }
  0x51   :  { %428 = vmatprep.subr.bf16.mxu0 %v585_v2 }
  0x52   :  { %448 = vmatpush3.bf16.msra.mxu1 %v447_v49 }
  0x53   :  { %449 = vmatprep.subr.bf16.mxu1 %v585_v2 }
  0x54   :  { %430 = vmatpush3.bf16.msra.mxu0 %v429_v30 }
  0x55   :  { %431 = vmatprep.subr.bf16.mxu0 %v585_v2 }
  0x56   :  { %451 = vmatpush3.bf16.msra.mxu1 %v450_v52 }
  0x57   :  { %452 = vmatprep.subr.bf16.mxu1 %v585_v2 }
  0x58   :  { %433 = vmatpush3.bf16.msra.mxu0 %v432_v37 }
  0x5a   :  { %454 = vmatpush3.bf16.msra.mxu1 %v453_v55 }
  0x5b   :  { %455 = vmatprep.subr.bf16.mxu1 %v585_v2 }
  0x5e   :  { %457 = vmatpush3.bf16.msra.mxu1 %v456_v58 }
  0xb8   :  { %v74_v60 = vpop.permute.xlu1 %73  ;;  %v62_v61 = vpop.permute.xlu0 %61 }
  0xb9   :  { %vm63_vm1 = vcmp.eq.s32.totalorder %v59_v62, %v62_v61  ;;  %vm75_vm2 = vcmp.eq.s32.totalorder %v59_v62, %v74_v60 }
  0xba   :  { %v64_v1 = vsel %vm63_vm1, 1.0, %v593_v33  ;;  %v76_v5 = vsel %vm75_vm2, 1.0, %v593_v33 }
  0xbd   :  { %v80_v63 = vpop.permute.xlu1 %79  ;;  %v68_v0 = vpop.permute.xlu0 %67 }
  0xbe   :  { %vm69_vm3 = vcmp.eq.s32.totalorder %v59_v62, %v68_v0  ;;  %vm81_vm4 = vcmp.eq.s32.totalorder %v59_v62, %v80_v63 }
  0xbf   :  { %v70_v3 = vsel %vm69_vm3, 1.0, %v593_v33  ;;  %v82_v8 = vsel %vm81_vm4, 1.0, %v593_v33 }
  0xc0   :  { %v71_v4 = vadd.f32 %v70_v3, %v64_v1 }
  0xc2   :  { %v77_v6 = vadd.f32 %v76_v5, %v71_v4  ;;  %v86_v2 = vpop.permute.xlu1 %85  ;;  %v92_v7 = vpop.permute.xlu0 %91 }
  0xc3   :  { %vm87_vm5 = vcmp.eq.s32.totalorder %v59_v62, %v86_v2  ;;  %vm93_vm6 = vcmp.eq.s32.totalorder %v59_v62, %v92_v7 }
  0xc4   :  { %v83_v9 = vadd.f32 %v82_v8, %v77_v6  ;;  %v88_v10 = vsel %vm87_vm5, 1.0, %v593_v33  ;;  %v94_v12 = vsel %vm93_vm6, 1.0, %v593_v33 }
  0xc6   :  { %v89_v11 = vadd.f32 %v88_v10, %v83_v9 }
  0xc7   :  { %v98_v13 = vpop.permute.xlu1 %97 }
  0xc8   :  { %vm99_vm7 = vcmp.eq.s32.totalorder %v59_v62, %v98_v13  ;;  %v95_v14 = vadd.f32 %v94_v12, %v89_v11 }
  0xc9   :  { %v100_v15 = vsel %vm99_vm7, 1.0, %v593_v33 }
  0xca   :  { %v101_v17 = vadd.f32 %v100_v15, %v95_v14 }
  0xcc   :  { %v104_v16 = vpop.permute.xlu1 %103 }
  0xcd   :  { %vm105_vm8 = vcmp.eq.s32.totalorder %v59_v62, %v104_v16 }
  0xce   :  { %v106_v18 = vsel %vm105_vm8, 1.0, %v593_v33 }
  0xcf   :  { %v107_v19 = vadd.f32 %v106_v18, %v101_v17 }
  0xd1   :  { %v108_v20 = vmul.f32 0.125, %v107_v19 }
  0xd3   :  { %373 = vmatmul.mubr.f32.vlgmr.msra.gmra.mrb[0].mxu0 %v108_v20 }
 0x1a6   :  { %v191_v21 = vpop.f32.mrb[0].mxu0 }
 0x1a7   :  { %v374_v22 = vpop.f32.mrb[1].mxu0  ;;  %408 = vmatmul.mubr.f32.vlgmr.msra.gmra.mrb[0].mxu1 %v191_v21 }
 0x27a   :  { %v284_v24 = vpop.f32.mrb[0].mxu1 }
 0x27b   :  { %v285_v25 = vadd.f32 %v305_v23, %v284_v24  ;;  %v409_v26 = vpop.f32.mrb[1].mxu1 }
 0x27d   :  { %288 = vst [vmem:[#allocation8] sm:$0xff] %v285_v25 }
 0x27e   :  { %561 = shalt.err (!%p558_p0)
}
 0x27f   :  { %s562_s5 = scalar_lea.hbm %s707_s4, 128 }
 0x280   :  { %p563_p1 = scmp.ne.s32.totalorder %s707_s4, %s562_s5  ;;  %p566_p2 = scmp.lt.u32.totalorder %s562_s5, %s707_s4 }
 0x282   :  { %p568_p3 = pnand %p566_p2, %p563_p1 }
 0x284   :  { %571 = shalt.err (!%p568_p3)
}
 0x285   :  { %298 = dma.vmem_to_hbm [thread:$0]  %s296_s27, 128, %s707_s4, [#allocation4]  }
 0x286   :  { %576 = dma.done.wait [#allocation4], 128  }
 0x287   :  { %577 = vsyncadd [#allocation4], 4294967168 }
 0x288   :  { %302 = vsyncpa [#allocation3], 1 }
 0x289   :  { %303 = vsyncpa [#allocation6], 1 }
 0x28a   :  { %304 = vsyncpa [#allocation4], 1 }

</bundles_post_ra>
